<compile_context>
chip_gen: v7x
topology: tpu7x:2x2x1
jax: 0.10.0
libtpu: 0.0.40
codegen_flags: <defaults>
</compile_context>

<pallas_src>
import functools

import jax
import jax.numpy as jnp
from jax.experimental import pallas as pl
from jax.experimental.pallas import tpu as pltpu


def _round_up(n, m):
    return ((n + m - 1) // m) * m


def valuenet_kernel(x_ref, w1_ref, b1_ref, w2_ref, b2_ref, o_ref):
    # fc1 on the MXU: (H, S) bf16 . (S, TB) bf16 -> (H, TB) f32.
    # Batch (TB) is on the lane axis, so every vreg load/store is full-width.
    h = jnp.dot(w1_ref[...], x_ref[...], preferred_element_type=jnp.float32)
    h = jnp.maximum(h + b1_ref[...], 0.0)                     # (H, TB) f32, VPU epilogue
    # fc2: an M=1 contraction is not worth an MXU pass — broadcast-multiply by the
    # (H, 1) weight column and sublane-reduce over H (VPU/XLU), bit-true f32.
    v = jnp.sum(w2_ref[...] * h, axis=0, keepdims=True)       # (1, TB) f32
    # Lane-dense (1, TB) output row -> unmasked full-width stores.
    o_ref[...] = v + b2_ref[0, 0]                             # scalar bias from SMEM


def prepare_params(w1, b1, w2, b2):
    """One-time layout/dtype prep of torch.nn.Linear-layout weights.

    w1: (H, S), b1: (H,), w2: (1, H), b2: (1,)
    W1 is kept in its native (H, S) layout (the transposed dataflow wants it
    exactly like that); only the bf16 cast and bias/column reshapes are done here.
    """
    H, S = w1.shape
    return (
        jnp.asarray(w1, jnp.float32).astype(jnp.bfloat16),   # (H, S) bf16  (MXU lhs)
        jnp.asarray(b1, jnp.float32).reshape(H, 1),          # (H, 1) f32   (broadcast over lanes)
        jnp.asarray(w2, jnp.float32).reshape(H, 1),          # (H, 1) f32   (fc2 column, VPU)
        jnp.asarray(b2, jnp.float32).reshape(1, 1),          # (1, 1) f32   (SMEM scalar)
    )


@functools.partial(jax.jit, static_argnames=("tb_max", "force_pallas"))
def value_net_forward(x, params, *, tb_max=4096, force_pallas=False):
    """x: (B, S) float32; params from prepare_params(). Returns (B, 1) float32."""
    w1, b1, w2, b2 = params
    B, S = x.shape
    H = w1.shape[0]

    # Small-batch fast path: below one lane-tile of batch the pallas_call launch,
    # 128-padding and wrapper pass dwarf ~1 KiB of real work; a fused XLA
    # expression (same math: bf16 fc1, f32 epilogue) wins there.
    if B < 128 and not force_pallas:
        h = jnp.maximum(
            jnp.dot(x.astype(jnp.bfloat16), w1.T, preferred_element_type=jnp.float32)
            + b1[:, 0],
            0.0,
        )
        return h @ w2 + b2[0, 0]

    # --- Pallas path -------------------------------------------------------
    b_pad = _round_up(B, 128)
    # TB must be a multiple of 128 (lane-dense output row / legal tiling) and a
    # divisor of b_pad; take the largest such value up to tb_max.
    cap = min(max(tb_max // 128, 1) * 128, b_pad)
    TB = next(t for t in range(cap, 0, -128) if b_pad % t == 0)
    # If everything fits one tile, split in two (when still 128-aligned) so the
    # "parallel" batch axis load-balances over the two TensorCores on v7x.
    # Costs one extra ~0.35 us grid step on single-TC v5e/v6e — negligible.
    if b_pad // TB == 1 and TB >= 256 and (TB // 2) % 128 == 0:
        TB //= 2
    n_tiles = b_pad // TB

    # Single fused wrapper pass over x: cast f32->bf16, transpose so batch is the
    # lane axis, pad batch to b_pad.  (f32 read + bf16 write; kernel reads bf16.)
    x_t = jnp.pad(x.astype(jnp.bfloat16).T, ((0, 0), (0, b_pad - B)))   # (S, b_pad)

    out = pl.pallas_call(
        valuenet_kernel,
        out_shape=jax.ShapeDtypeStruct((1, b_pad), jnp.float32),
        grid=(n_tiles,),
        in_specs=[
            pl.BlockSpec((S, TB), lambda i: (0, i)),            # x^T tile: lane-dense, pipelined
            pl.BlockSpec((H, S), lambda i: (0, 0)),             # W1 (native layout): VMEM-resident
            pl.BlockSpec((H, 1), lambda i: (0, 0)),             # b1 column: resident
            pl.BlockSpec((H, 1), lambda i: (0, 0)),             # w2 column: resident
            pl.BlockSpec(memory_space=pltpu.MemorySpace.SMEM),  # b2 scalar: SMEM
        ],
        out_specs=pl.BlockSpec((1, TB), lambda i: (0, i)),       # lane-dense output row
        compiler_params=pltpu.CompilerParams(
            dimension_semantics=("parallel",),    # shard batch tiles over TCs (v7x)
            vmem_limit_bytes=32 * 1024 * 1024,    # safe on 64 MiB v7x VMEM
        ),
    )(x_t, w1, b1, w2, b2)

    # Drop the padded tail (relu(b1)-garbage columns) and restore (B, 1).
    return out[0, :B].reshape(B, 1)


def init_params(key, state_dim, hidden_dim):
    """Deterministic init mimicking PyTorch Linear default (uniform +/-1/sqrt(fan_in))."""
    k1, k2, k3, k4 = jax.random.split(key, 4)
    bound1 = 1.0 / jnp.sqrt(state_dim)
    bound2 = 1.0 / jnp.sqrt(hidden_dim)
    w1 = jax.random.uniform(k1, (hidden_dim, state_dim), jnp.float32, -bound1, bound1)
    b1 = jax.random.uniform(k2, (hidden_dim,), jnp.float32, -bound1, bound1)
    w2 = jax.random.uniform(k3, (1, hidden_dim), jnp.float32, -bound2, bound2)
    b2 = jax.random.uniform(k4, (1,), jnp.float32, -bound2, bound2)
    return w1, b1, w2, b2


if __name__ == "__main__":
    state_dim, hidden_dim = 4, 32
    key = jax.random.PRNGKey(0)
    kx, kx2, kp = jax.random.split(key, 3)

    w1, b1, w2, b2 = init_params(kp, state_dim, hidden_dim)
    params = prepare_params(w1, b1, w2, b2)      # one-time layout / dtype prep

    # Small RL-sized batch, forced through the Pallas kernel (single 128 tile).
    x_small = jax.random.normal(kx, (8, state_dim), jnp.float32)
    out_small = value_net_forward(x_small, params, force_pallas=True)
    jax.block_until_ready(out_small)

    # Larger non-multiple-of-128 batch: exercises padding + tail slicing (Pallas path).
    x_big = jax.random.normal(kx2, (300, state_dim), jnp.float32)
    out_big = value_net_forward(x_big, params)
    jax.block_until_ready(out_big)

    # References: (a) exact math on the same bf16-rounded fc1 inputs the kernel
    # sees (tight check), (b) full-f32 math (loose check, bf16 cast tolerance).
    w1_r = w1.astype(jnp.bfloat16).astype(jnp.float32)

    def ref_bf16(x):
        x_r = x.astype(jnp.bfloat16).astype(jnp.float32)
        return jnp.maximum(x_r @ w1_r.T + b1, 0.0) @ w2.T + b2

    def ref_f32(x):
        return jnp.maximum(x @ w1.T + b1, 0.0) @ w2.T + b2

    assert out_small.shape == (8, 1)
    assert out_big.shape == (300, 1)
    assert jnp.allclose(out_small, ref_bf16(x_small), atol=1e-2, rtol=1e-2)
    assert jnp.allclose(out_big, ref_bf16(x_big), atol=1e-2, rtol=1e-2)
    assert jnp.allclose(out_small, ref_f32(x_small), atol=5e-2, rtol=5e-2)
    assert jnp.allclose(out_big, ref_f32(x_big), atol=5e-2, rtol=5e-2)
    print("KERNEL_OK")
</pallas_src>

<mosaic_0001>
module attributes {stable_mosaic.version = 11 : i64} {
  func.func @valuenet_kernel(%arg0: i32, %arg1: memref<4x128xbf16, #tpu.memory_space<vmem>>, %arg2: memref<32x4xbf16, #tpu.memory_space<vmem>>, %arg3: memref<32x1xf32, #tpu.memory_space<vmem>>, %arg4: memref<32x1xf32, #tpu.memory_space<vmem>>, %arg5: memref<1x1xf32, #tpu.memory_space<smem>>, %arg6: memref<1x128xf32, #tpu.memory_space<vmem>>) attributes {dimension_semantics = [#tpu.dimension_semantics<parallel>], iteration_bounds = array<i64: 1>, scalar_prefetch = 0 : i64, scratch_operands = 0 : i64, tpu.core_type = #tpu.core_type<tc>, window_params = [{transform_indices = @transform_0, window_bounds = array<i64: 4, 128>}, {pipeline_mode = #tpu.pipeline_mode<synchronous>, transform_indices = @transform_1, window_bounds = array<i64: 32, 4>}, {pipeline_mode = #tpu.pipeline_mode<synchronous>, transform_indices = @transform_2, window_bounds = array<i64: 32, 1>}, {pipeline_mode = #tpu.pipeline_mode<synchronous>, transform_indices = @transform_3, window_bounds = array<i64: 32, 1>}, {transform_indices = @transform_4, window_bounds = array<i64: 1, 1>}, {transform_indices = @transform_5, window_bounds = array<i64: 1, 128>}]} {
    %c0 = arith.constant 0 : index
    %c0_0 = arith.constant 0 : index
    %0 = vector.load %arg2[%c0, %c0_0] : memref<32x4xbf16, #tpu.memory_space<vmem>>, vector<32x4xbf16>
    %c0_1 = arith.constant 0 : index
    %c0_2 = arith.constant 0 : index
    %1 = vector.load %arg1[%c0_1, %c0_2] : memref<4x128xbf16, #tpu.memory_space<vmem>>, vector<4x128xbf16>
    %cst = arith.constant dense<0.000000e+00> : vector<32x128xf32>
    %2 = tpu.matmul %0, %1, %cst {dimension_numbers = #tpu.dot_dimension_numbers<[1], [0], [0], [1], [0, 0, 1, 1], [], []>} : vector<32x4xbf16>, vector<4x128xbf16>, vector<32x128xf32> -> vector<32x128xf32>
    %c0_3 = arith.constant 0 : index
    %c0_4 = arith.constant 0 : index
    %3 = vector.load %arg3[%c0_3, %c0_4] : memref<32x1xf32, #tpu.memory_space<vmem>>, vector<32x1xf32>
    %4 = vector.broadcast %3 : vector<32x1xf32> to vector<32x128xf32>
    %5 = arith.addf %2, %4 : vector<32x128xf32>
    %cst_5 = arith.constant 0.000000e+00 : f32
    %6 = vector.broadcast %cst_5 : f32 to vector<32x128xf32>
    %7 = arith.maximumf %5, %6 : vector<32x128xf32>
    %c0_6 = arith.constant 0 : index
    %c0_7 = arith.constant 0 : index
    %8 = vector.load %arg4[%c0_6, %c0_7] : memref<32x1xf32, #tpu.memory_space<vmem>>, vector<32x1xf32>
    %9 = vector.broadcast %8 : vector<32x1xf32> to vector<32x128xf32>
    %10 = arith.mulf %9, %7 : vector<32x128xf32>
    %cst_8 = arith.constant dense<0.000000e+00> : vector<128xf32>
    %11 = vector.multi_reduction <add>, %10, %cst_8 [0] : vector<32x128xf32> to vector<128xf32>
    %12 = vector.shape_cast %11 : vector<128xf32> to vector<1x128xf32>
    %c0_9 = arith.constant 0 : index
    %c0_10 = arith.constant 0 : index
    %13 = memref.load %arg5[%c0_9, %c0_10] : memref<1x1xf32, #tpu.memory_space<smem>>
    %14 = vector.broadcast %13 : f32 to vector<1x128xf32>
    %15 = arith.addf %12, %14 : vector<1x128xf32>
    %c0_11 = arith.constant 0 : index
    %c0_12 = arith.constant 0 : index
    %16 = vector.load %arg6[%c0_11, %c0_12] : memref<1x128xf32, #tpu.memory_space<vmem>>, vector<1x128xf32>
    tpu.vector_store %arg6[%c0_11, %c0_12], %15 {strides = array<i32>} : memref<1x128xf32, #tpu.memory_space<vmem>>, vector<1x128xf32>,
    return
  }
  func.func @transform_0(%arg0: i32) -> (i32, i32) {
    %c0_i32 = arith.constant 0 : i32
    %c0_i32_0 = arith.constant 0 : i32
    return %c0_i32, %arg0 : i32, i32
  }
  func.func @transform_1(%arg0: i32) -> (i32, i32) {
    %c0_i32 = arith.constant 0 : i32
    %c0_i32_0 = arith.constant 0 : i32
    %c0_i32_1 = arith.constant 0 : i32
    return %c0_i32, %c0_i32_0 : i32, i32
  }
  func.func @transform_2(%arg0: i32) -> (i32, i32) {
    %c0_i32 = arith.constant 0 : i32
    %c0_i32_0 = arith.constant 0 : i32
    %c0_i32_1 = arith.constant 0 : i32
    return %c0_i32, %c0_i32_0 : i32, i32
  }
  func.func @transform_3(%arg0: i32) -> (i32, i32) {
    %c0_i32 = arith.constant 0 : i32
    %c0_i32_0 = arith.constant 0 : i32
    %c0_i32_1 = arith.constant 0 : i32
    return %c0_i32, %c0_i32_0 : i32, i32
  }
  func.func @transform_4(%arg0: i32) -> (i32, i32) {
    %c0_i32 = arith.constant 0 : i32
    %c0_i32_0 = arith.constant 0 : i32
    %c0_i32_1 = arith.constant 0 : i32
    return %c0_i32, %c0_i32_0 : i32, i32
  }
  func.func @transform_5(%arg0: i32) -> (i32, i32) {
    %c0_i32 = arith.constant 0 : i32
    %c0_i32_0 = arith.constant 0 : i32
    return %c0_i32, %arg0 : i32, i32
  }
}

</mosaic_0001>

<bundles_post_ra>
// kernel: value_net_forward.1
= control target key start
LH: loop header
LB: loop body
LE: loop exit
PB: predicated region body
PF: predicated region fallthrough
CT: control target
= control target key end

     0   :  { %vm68_vm0 = vcmask 1041408   ;;  %vm61_vm1 = vcmask 31744   ;;  %v189_v1 = vmov 0   ;;  %s261_s0 = inlined_call_operand.vmem [shape: bf16[4,128], index: 0, kind: input, shape index: {}]   ;;  %s262_s1 = inlined_call_operand.vmem [shape: bf16[32,4], index: 1, kind: input, shape index: {}]   ;;  %s263_s2 = inlined_call_operand.vmem [shape: f32[32,1], index: 2, kind: input, shape index: {}]   ;;  %s264_s3 = inlined_call_operand.vmem [shape: f32[32,1], index: 3, kind: input, shape index: {}]   ;;  %s265_s4 = inlined_call_operand.<no memory space> [shape: f32[1,1], index: 4, kind: input, shape index: {}]   ;;  %s266_s5 = inlined_call_operand.vmem [shape: f32[1,128], index: 5, kind: output, shape index: {}]  }
   0x1   :  { %v26_v0 = vld [vmem:[%s261_s0] sm:$0x3]  ;;  %185 = vset.pattern.permute.xlu0 %v189_v1  ;;  %186 = vset.pattern.permute.xlu1 %v189_v1  ;;  %v188_v4 = vld [vmem:[%s262_s1 + $0x8] sm:$0xff]   ;;  %v29_v6 = vld [vmem:[%s263_s2 + $0x10] sm:$0xff]  ;;  %v163_v45 = vstv %s265_s4 }
   0x2   :  { %183 = vmatprep.subr.msk.bf16.mxu0 %vm68_vm0, %v26_v0  ;;  %v70_v2 = vsel %vm68_vm0, %v26_v0, 0  ;;  %v187_v3 = vld [vmem:[%s262_s1] sm:$0xff]   ;;  %43 = vperm.xlu1 %186, %v29_v6   ;;  %v28_v7 = vld [vmem:[%s263_s2 + $0x8] sm:$0xff]  ;;  %v30_v8 = vld [vmem:[%s263_s2 + $0x18] sm:$0xff] }
   0x3   :  { %178 = vmatpush3.bf16.msra.mxu0 %v70_v2  ;;  %v27_v5 = vld [vmem:[%s263_s2] sm:$0xff]  ;;  %179 = vmatprep.mubr.msk.bf16.mxu0 %vm61_vm1, %v187_v3  ;;  %v126_v10 = vld [vmem:[%s264_s3 + $0x8] sm:$0xff]  ;;  %v127_v11 = vld [vmem:[%s264_s3 + $0x10] sm:$0xff] }
   0x4   :  { %33 = vperm.xlu0 %185, %v27_v5   ;;  %v125_v9 = vld [vmem:[%s264_s3] sm:$0xff]  ;;  %v128_v12 = vld [vmem:[%s264_s3 + $0x18] sm:$0xff] }
   0x6   :  { %180 = vmatmul.mubr.msk.bf16.vlgmr.msra.gmra.mrb[0].mxu0 %vm61_vm1, %v188_v4  ;;  %48 = vperm.xlu1 %186, %v30_v8  }
   0x8   :  { %38 = vperm.xlu0 %185, %v28_v7  }
   0xa   :  { %136 = vperm.xlu1 %186, %v126_v10  }
   0xc   :  { %131 = vperm.xlu0 %185, %v125_v9  }
   0xe   :  { %146 = vperm.xlu1 %186, %v128_v12  }
  0x10   :  { %141 = vperm.xlu0 %185, %v127_v11  }
  0x81   :  { %v44_v14 = vpop.permute.xlu1 %43 }
  0x83   :  { %v34_v13 = vpop.permute.xlu0 %33 }
  0x85   :  { %v49_v16 = vpop.permute.xlu1 %48 }
  0x87   :  { %v39_v15 = vpop.permute.xlu0 %38 }
  0x89   :  { %v137_v27 = vpop.permute.xlu1 %136 }
  0x8b   :  { %v132_v22 = vpop.permute.xlu0 %131 }
  0x8d   :  { %v147_v36 = vpop.permute.xlu1 %146 }
  0x8f   :  { %v142_v33 = vpop.permute.xlu0 %141 }
  0xd9   :  { %v181_v17 = vpop.f32.mrb[0].mxu0 }
  0xda   :  { %v106_v18 = vpop.f32.mrb[1].mxu0  ;;  %v115_v19 = vadd.f32 %v181_v17, %v44_v14 }
  0xdb   :  { %v107_v20 = vadd.f32 %v106_v18, %v34_v13  ;;  %v182_v21 = vpop.f32.mrb[2].mxu0 }
  0xdc   :  { %v109_v23 = vpop.f32.mrb[3].mxu0  ;;  %v118_v25 = vadd.f32 %v182_v21, %v49_v16  ;;  %v123_v28 = vmax.f32 %v115_v19, 0.0 }
  0xdd   :  { %v121_v24 = vmax.f32 %v107_v20, 0.0  ;;  %v110_v26 = vadd.f32 %v109_v23, %v39_v15 }
  0xde   :  { %v124_v31 = vmax.f32 %v118_v25, 0.0  ;;  %v151_v34 = vmul.f32 %v142_v33, %v123_v28 }
  0xdf   :  { %v122_v29 = vmax.f32 %v110_v26, 0.0  ;;  %v149_v30 = vmul.f32 %v132_v22, %v121_v24 }
  0xe0   :  { %v152_v37 = vmul.f32 %v147_v36, %v124_v31 }
  0xe1   :  { %v150_v32 = vmul.f32 %v137_v27, %v122_v29 }
  0xe3   :  { %v153_v35 = vadd.f32 %v150_v32, %v149_v30 }
  0xe5   :  { %v154_v38 = vadd.f32 %v153_v35, %v151_v34 }
  0xe7   :  { %v155_v39 = vadd.f32 %v154_v38, %v152_v37 }
  0xe9   :  { %v156_v40 = vrot.slane %v155_v39, 4 }
  0xeb   :  { %v157_v41 = vadd.f32 %v156_v40, %v155_v39 }
  0xed   :  { %v158_v42 = vrot.slane %v157_v41, 2 }
  0xef   :  { %v159_v43 = vadd.f32 %v158_v42, %v157_v41 }
  0xf1   :  { %v160_v44 = vrot.slane %v159_v43, 1 }
  0xf3   :  { %v161_v46 = vadd.f32 %v160_v44, %v159_v43 }
  0xf5   :  { %v164_v47 = vadd.f32 %v163_v45, %v161_v46 }
  0xf7   :  { %165 = vst [vmem:[%s266_s5] sm:$0x1] %v164_v47 }

</bundles_post_ra>
